<compile_context>
chip_gen: v7x
topology: tpu7x:2x2x1
jax: 0.10.0
libtpu: 0.0.40
codegen_flags: <defaults>
</compile_context>

<pallas_src>
import jax
import jax.numpy as jnp
from jax import lax
from jax.experimental import pallas as pl
from jax.experimental.pallas import tpu as pltpu

NEG_SLOPE = 0.2      # nn.LeakyReLU(negative_slope=0.2)
ALPHA = 0.5          # self.alpha = 0.5
NEG_INF = -1e30


def _projection_kernel(x_ref, xt_ref, w_ref, wt_ref, al_ref, art_ref,
                       feat_t_ref, el_ref, ert_ref):
    """All-head projection, emitted in the exact layouts the aggregation kernel consumes.

    feat and feat^T are both produced straight off the MXU (the duplicated x^T@W^T matmul is
    negligible work), so neither kernel needs an in-kernel (XLU) transpose.
    """
    feat = jnp.dot(x_ref[...], w_ref[...], preferred_element_type=jnp.float32)       # (N, HF)
    feat_t = jnp.dot(wt_ref[...], xt_ref[...], preferred_element_type=jnp.float32)   # (HF, N)
    # el / er^T via block-diagonal attention matrices (tiny f32 matmuls, kept exact).
    el_ref[...] = jnp.dot(feat, al_ref[...], preferred_element_type=jnp.float32)     # (N, H)
    ert_ref[...] = jnp.dot(art_ref[...], feat_t, preferred_element_type=jnp.float32)  # (H, N)
    feat_t_ref[...] = feat_t.astype(jnp.bfloat16)


def pre_gat_conv(x, adj_sd_i8, alpha_w_sm, w_all, attn_l, attn_r, bias, *, block_dst=None):
    """preGATConv forward on a dense graph. Returns (N, H, F) float32."""
    N, Din = x.shape
    H, F = attn_l.shape
    HF = H * F
    assert w_all.shape == (Din, HF)
    assert adj_sd_i8.shape == (N, N) and alpha_w_sm.shape == (N, N)

    # Destination-column tile: single tile for small graphs, 256 otherwise.
    # (v7x note: for very large N use 128 and/or src-axis tiling -- see TODO above.)
    if block_dst is None:
        block_dst = N if N <= 256 else 256
    TD = block_dst
    assert N % TD == 0, "N must be a multiple of the dst tile size"
    num_tiles = N // TD

    # Per-head attention vectors as block-diagonal matrices -> el / er^T are MXU matmuls.
    eye = jnp.eye(H, dtype=jnp.float32)
    al_mat = (attn_l.astype(jnp.float32)[:, :, None] * eye[:, None, :]).reshape(HF, H)      # (HF, H)
    art_mat = (attn_r.astype(jnp.float32)[:, :, None] * eye[:, None, :]).reshape(HF, H).T   # (H, HF)
    bias_col = bias.reshape(HF, 1).astype(jnp.float32)

    # bf16 MXU operands (f32 accumulation happens inside the kernels).
    x_bf = x.astype(jnp.bfloat16)
    w_bf = w_all.astype(jnp.bfloat16)

    # ---------------- Phase 1: projection (runs once, outside the dst-tile grid) ----------
    feat_t, el, er_t = pl.pallas_call(
        _projection_kernel,
        out_shape=(
            jax.ShapeDtypeStruct((HF, N), jnp.bfloat16),   # feat^T  (src along lanes)
            jax.ShapeDtypeStruct((N, H), jnp.float32),     # el      (src along sublanes)
            jax.ShapeDtypeStruct((H, N), jnp.float32),     # er^T    (dst along lanes)
        ),
    )(x_bf, x_bf.T, w_bf, w_bf.T, al_mat, art_mat)

    # ------------- Phase 2: per-dst-tile edge softmax + blend + aggregation ---------------
    def agg_kernel(feat_t_ref, el_ref, ert_ref, b_ref, adj_ref, aws_ref, o_ref):
        mask = adj_ref[...] > 0                                      # (N_src, TD)
        aw = aws_ref[...].astype(jnp.float32)                        # alpha * softmax(w)
        # H is small & static; each head's (N, TD) temporaries die at its o_ref store,
        # so the unrolled loop does not pile up live ranges.
        for h in range(H):
            e = el_ref[:, h:h + 1] + ert_ref[h:h + 1, :]             # (N_src, TD)
            e = jnp.maximum(e, NEG_SLOPE * e)                        # LeakyReLU, 2 VALU ops
            e = jnp.where(mask, e, NEG_INF)                          # single mask select
            e = e - jnp.max(e, axis=0, keepdims=True)
            p = jnp.exp(e)                                           # masked entries -> 0
            inv = pl.reciprocal(jnp.sum(p, axis=0, keepdims=True),
                                approx=True) * (1.0 - ALPHA)         # fold blend scale
            a = (p * inv + aw).astype(jnp.bfloat16)                  # blended attention
            # Lane-dense MXU orientation: (F, N_src) @ (N_src, TD) -> (F, TD).
            res = jnp.dot(feat_t_ref[h * F:(h + 1) * F, :], a,
                          preferred_element_type=jnp.float32)
            o_ref[h * F:(h + 1) * F, :] = res + b_ref[h * F:(h + 1) * F, :]

    # VMEM budget: double-buffered per-tile streams + invariants (clamped to v7x's 64 MiB).
    stream_bytes = N * TD * (1 + 2) + H * TD * 4 + HF * TD * 4       # adj + w_sm + er^T + out
    invariant_bytes = HF * N * 2 + N * H * 4 + HF * 4                # feat^T + el + bias
    vmem_limit = int(min(max(2 * (stream_bytes + invariant_bytes) + (1 << 20),
                             32 * 1024 * 1024), 64 * 1024 * 1024))

    out_t = pl.pallas_call(
        agg_kernel,
        out_shape=jax.ShapeDtypeStruct((HF, N), jnp.float32),
        grid_spec=pltpu.PrefetchScalarGridSpec(
            num_scalar_prefetch=0,
            grid=(num_tiles,),
            in_specs=[
                pl.BlockSpec((HF, N), lambda j: (0, 0)),   # feat^T           (grid-invariant)
                pl.BlockSpec((N, H), lambda j: (0, 0)),    # el               (grid-invariant)
                pl.BlockSpec((H, TD), lambda j: (0, j)),   # er^T             (per dst tile)
                pl.BlockSpec((HF, 1), lambda j: (0, 0)),   # bias column      (grid-invariant)
                pl.BlockSpec((N, TD), lambda j: (0, j)),   # adjacency int8   (per dst tile)
                pl.BlockSpec((N, TD), lambda j: (0, j)),   # alpha*softmax(w) bf16 (per tile)
            ],
            out_specs=pl.BlockSpec((HF, TD), lambda j: (0, j)),
        ),
        compiler_params=pltpu.CompilerParams(
            # No scratch carry across dst tiles anymore -> shard them across cores (v7x: 2 TCs).
            dimension_semantics=("parallel",),
            vmem_limit_bytes=vmem_limit),
    )(feat_t, el, er_t, bias_col, adj_sd_i8, alpha_w_sm)

    # (HF, N) -> (N, H, F): one cheap transpose of the small output slab in XLA.
    return out_t.T.reshape(N, H, F)


def precompute_edge_weights(adj_sd, edge_w_sd, alpha=ALPHA):
    """One-time graph setup (NOT on the per-call path).

    Returns int8 adjacency and ALPHA * edge_softmax(w), both in (src, dst) layout; the
    softmax is exact (no approx reciprocal) since it never depends on x or learned params.
    """
    mask = adj_sd > 0
    # DGL raises on zero in-degree (allow_zero_in_degree=False); the kernel's underflow
    # trick also relies on every dst having at least one incoming edge (e.g. self-loops).
    if not bool(jnp.all(jnp.sum(mask, axis=0) > 0)):
        raise ValueError("graph has zero in-degree nodes; add self-loops first")
    we = jnp.where(mask, edge_w_sd, NEG_INF)
    we = we - jnp.max(we, axis=0, keepdims=True)
    pw = jnp.where(mask, jnp.exp(we), 0.0)
    w_sm = pw / jnp.sum(pw, axis=0, keepdims=True)
    return adj_sd.astype(jnp.int8), (alpha * w_sm).astype(jnp.bfloat16)


def _reference(x, adj_sd, edge_w_sd, w_all, attn_l, attn_r, bias):
    """Pure-JAX f32 reference mirroring the torch/DGL semantics (adj_sd is (src, dst))."""
    N, _ = x.shape
    H, F = attn_l.shape
    feat = jnp.dot(x, w_all, precision=lax.Precision.HIGHEST).reshape(N, H, F)
    el = jnp.sum(feat * attn_l[None], axis=-1)               # (N, H)
    er = jnp.sum(feat * attn_r[None], axis=-1)               # (N, H)
    e = el[:, None, :] + er[None, :, :]                      # (src, dst, H)
    e = jnp.where(e > 0, e, NEG_SLOPE * e)
    mask = adj_sd > 0
    e = jnp.where(mask[:, :, None], e, NEG_INF)
    e = e - jnp.max(e, axis=0, keepdims=True)
    p = jnp.where(mask[:, :, None], jnp.exp(e), 0.0)
    a = p / jnp.sum(p, axis=0, keepdims=True)                # softmax over incoming edges
    we = jnp.where(mask, edge_w_sd, NEG_INF)
    we = we - jnp.max(we, axis=0, keepdims=True)
    pw = jnp.where(mask, jnp.exp(we), 0.0)
    w_sm = pw / jnp.sum(pw, axis=0, keepdims=True)           # (src, dst)
    a = (1.0 - ALPHA) * a + ALPHA * w_sm[:, :, None]
    rst = jnp.einsum("uvh,uhf->vhf", a, feat, precision=lax.Precision.HIGHEST)
    return rst + bias.reshape(1, H, F)


if __name__ == "__main__":
    # Small shapes: N=16 nodes, Din=8 input feats, H=4 heads, F=8 out feats per head.
    N, Din, H, F = 16, 8, 4, 8
    key = jax.random.PRNGKey(0)
    kx, ka, kw, kl, kr, kb, ke = jax.random.split(key, 7)

    x = jax.random.normal(kx, (N, Din), dtype=jnp.float32)

    # Random directed graph + self-loops (guarantees nonzero in-degree, as DGL requires).
    adj_sd = jax.random.bernoulli(ka, p=0.35, shape=(N, N)).astype(jnp.float32)
    adj_sd = jnp.maximum(adj_sd, jnp.eye(N, dtype=jnp.float32))      # adj[u, v]: edge u -> v
    edge_w_sd = jax.random.uniform(ke, (N, N), dtype=jnp.float32)    # graph.edata['w']

    # Xavier-normal-style parameter init (gain = sqrt(2), deterministic).
    gain = jnp.sqrt(2.0)
    w_all = gain * jnp.sqrt(2.0 / (Din + H * F)) * jax.random.normal(
        kw, (Din, H * F), dtype=jnp.float32)                         # fc.weight.T
    attn_l = gain * jnp.sqrt(2.0 / (H * F + 1)) * jax.random.normal(
        kl, (H, F), dtype=jnp.float32)
    attn_r = gain * jnp.sqrt(2.0 / (H * F + 1)) * jax.random.normal(
        kr, (H, F), dtype=jnp.float32)
    bias = 0.1 * jax.random.normal(kb, (H * F,), dtype=jnp.float32)

    # One-time graph setup: int8 adjacency + alpha-prescaled, bf16 edge-weight softmax.
    adj_i8, alpha_w_sm = precompute_edge_weights(adj_sd, edge_w_sd)

    out = pre_gat_conv(x, adj_i8, alpha_w_sm, w_all, attn_l, attn_r, bias)
    out = jax.block_until_ready(out)

    ref = _reference(x, adj_sd, edge_w_sd, w_all, attn_l, attn_r, bias)
    assert out.shape == (N, H, F)
    max_err = float(jnp.max(jnp.abs(out - ref)))
    # Error budget: bf16 storage of feat^T, the blended attention and alpha*w_sm (~1e-2)
    # plus the EUP approximate reciprocal (~1e-3 rel).  A semantic bug would be O(0.1+).
    assert jnp.allclose(out, ref, atol=4e-2, rtol=4e-2), max_err

    print("KERNEL_OK")
</pallas_src>

<mosaic_0001>
module attributes {stable_mosaic.version = 11 : i64} {
  func.func @_projection_kernel(%arg0: memref<16x8xbf16, #tpu.memory_space<vmem>>, %arg1: memref<8x16xbf16, #tpu.memory_space<vmem>>, %arg2: memref<8x32xbf16, #tpu.memory_space<vmem>>, %arg3: memref<32x8xbf16, #tpu.memory_space<vmem>>, %arg4: memref<32x4xf32, #tpu.memory_space<vmem>>, %arg5: memref<4x32xf32, #tpu.memory_space<vmem>>, %arg6: memref<32x16xbf16, #tpu.memory_space<vmem>>, %arg7: memref<16x4xf32, #tpu.memory_space<vmem>>, %arg8: memref<4x16xf32, #tpu.memory_space<vmem>>) attributes {dimension_semantics = [], scalar_prefetch = 0 : i64, scratch_operands = 0 : i64, tpu.core_type = #tpu.core_type<tc>} {
    %c0 = arith.constant 0 : index
    %c0_0 = arith.constant 0 : index
    %0 = vector.load %arg0[%c0, %c0_0] : memref<16x8xbf16, #tpu.memory_space<vmem>>, vector<16x8xbf16>
    %c0_1 = arith.constant 0 : index
    %c0_2 = arith.constant 0 : index
    %1 = vector.load %arg2[%c0_1, %c0_2] : memref<8x32xbf16, #tpu.memory_space<vmem>>, vector<8x32xbf16>
    %cst = arith.constant dense<0.000000e+00> : vector<16x32xf32>
    %2 = tpu.matmul %0, %1, %cst {dimension_numbers = #tpu.dot_dimension_numbers<[1], [0], [0], [1], [0, 0, 1, 1], [], []>} : vector<16x8xbf16>, vector<8x32xbf16>, vector<16x32xf32> -> vector<16x32xf32>
    %c0_3 = arith.constant 0 : index
    %c0_4 = arith.constant 0 : index
    %3 = vector.load %arg3[%c0_3, %c0_4] : memref<32x8xbf16, #tpu.memory_space<vmem>>, vector<32x8xbf16>
    %c0_5 = arith.constant 0 : index
    %c0_6 = arith.constant 0 : index
    %4 = vector.load %arg1[%c0_5, %c0_6] : memref<8x16xbf16, #tpu.memory_space<vmem>>, vector<8x16xbf16>
    %cst_7 = arith.constant dense<0.000000e+00> : vector<32x16xf32>
    %5 = tpu.matmul %3, %4, %cst_7 {dimension_numbers = #tpu.dot_dimension_numbers<[1], [0], [0], [1], [0, 0, 1, 1], [], []>} : vector<32x8xbf16>, vector<8x16xbf16>, vector<32x16xf32> -> vector<32x16xf32>
    %c0_8 = arith.constant 0 : index
    %c0_9 = arith.constant 0 : index
    %6 = vector.load %arg4[%c0_8, %c0_9] : memref<32x4xf32, #tpu.memory_space<vmem>>, vector<32x4xf32>
    %cst_10 = arith.constant dense<0.000000e+00> : vector<16x4xf32>
    %7 = tpu.matmul %2, %6, %cst_10 {dimension_numbers = #tpu.dot_dimension_numbers<[1], [0], [0], [1], [0, 0, 1, 1], [], []>} : vector<16x32xf32>, vector<32x4xf32>, vector<16x4xf32> -> vector<16x4xf32>
    %c0_11 = arith.constant 0 : index
    %c0_12 = arith.constant 0 : index
    %8 = vector.load %arg7[%c0_11, %c0_12] : memref<16x4xf32, #tpu.memory_space<vmem>>, vector<16x4xf32>
    tpu.vector_store %arg7[%c0_11, %c0_12], %7 {strides = array<i32>} : memref<16x4xf32, #tpu.memory_space<vmem>>, vector<16x4xf32>,
    %c0_13 = arith.constant 0 : index
    %c0_14 = arith.constant 0 : index
    %9 = vector.load %arg5[%c0_13, %c0_14] : memref<4x32xf32, #tpu.memory_space<vmem>>, vector<4x32xf32>
    %cst_15 = arith.constant dense<0.000000e+00> : vector<4x16xf32>
    %10 = tpu.matmul %9, %5, %cst_15 {dimension_numbers = #tpu.dot_dimension_numbers<[1], [0], [0], [1], [0, 0, 1, 1], [], []>} : vector<4x32xf32>, vector<32x16xf32>, vector<4x16xf32> -> vector<4x16xf32>
    %c0_16 = arith.constant 0 : index
    %c0_17 = arith.constant 0 : index
    %11 = vector.load %arg8[%c0_16, %c0_17] : memref<4x16xf32, #tpu.memory_space<vmem>>, vector<4x16xf32>
    tpu.vector_store %arg8[%c0_16, %c0_17], %10 {strides = array<i32>} : memref<4x16xf32, #tpu.memory_space<vmem>>, vector<4x16xf32>,
    %12 = arith.truncf %5 : vector<32x16xf32> to vector<32x16xbf16>
    %c0_18 = arith.constant 0 : index
    %c0_19 = arith.constant 0 : index
    %13 = vector.load %arg6[%c0_18, %c0_19] : memref<32x16xbf16, #tpu.memory_space<vmem>>, vector<32x16xbf16>
    tpu.vector_store %arg6[%c0_18, %c0_19], %12 {strides = array<i32>} : memref<32x16xbf16, #tpu.memory_space<vmem>>, vector<32x16xbf16>,
    return
  }
}

</mosaic_0001>

<bundles_post_ra>
// kernel: tpu_custom_call.1
= control target key start
LH: loop header
LB: loop body
LE: loop exit
PB: predicated region body
PF: predicated region fallthrough
CT: control target
= control target key end

     0   :  { %vm40_vm0 = vcmask 1043456   ;;  %vm36_vm1 = vcmask 64512   ;;  %v478_v5 = vmov 0.0   ;;  %vm479_vm2 = vmmov 0   ;;  %s598_s0 = inlined_call_operand.vmem [shape: bf16[16,8], index: 0, kind: input, shape index: {}]   ;;  %s599_s1 = inlined_call_operand.vmem [shape: bf16[8,16], index: 1, kind: input, shape index: {}]   ;;  %s600_s2 = inlined_call_operand.vmem [shape: bf16[8,32], index: 2, kind: input, shape index: {}]   ;;  %s601_s3 = inlined_call_operand.vmem [shape: bf16[32,8], index: 3, kind: input, shape index: {}]   ;;  %s602_s4 = inlined_call_operand.vmem [shape: f32[32,4], index: 4, kind: input, shape index: {}]   ;;  %s603_s5 = inlined_call_operand.vmem [shape: f32[4,32], index: 5, kind: input, shape index: {}]   ;;  %s604_s6 = inlined_call_operand.vmem [shape: bf16[32,16], index: 6, kind: output, shape index: {0}]   ;;  %s605_s7 = inlined_call_operand.vmem [shape: f32[16,4], index: 7, kind: output, shape index: {1}]   ;;  %s606_s8 = inlined_call_operand.hbm [shape: f32[4,16], index: 8, kind: output, shape index: {2}]  }
   0x1   :  { %v89_v0 = vld [vmem:[%s599_s1] sm:$0xf]  ;;  %v452_v3 = vld [vmem:[%s601_s3 + $0x8] sm:$0xff]   ;;  %398 = vmatprep.subr.bf16.mxu0 %v478_v5  ;;  %400 = vmatprep.mubr.msk.bf16.mxu0 %vm479_vm2, %v478_v5 }
   0x2   :  { %446 = vmatprep.subr.msk.bf16.mxu1 %vm40_vm0, %v89_v0  ;;  %v107_v1 = vsel %vm40_vm0, %v89_v0, 0  ;;  %v451_v2 = vld [vmem:[%s601_s3] sm:$0xff]  }
   0x3   :  { %405 = vmatpush3.bf16.msra.mxu1 %v107_v1  ;;  %v30_v4 = vld [vmem:[%s600_s2] sm:$0xf]  ;;  %406 = vmatprep.mubr.msk.bf16.mxu1 %vm36_vm1, %v451_v2 }
   0x4   :  { %v42_v6 = vsel %vm40_vm0, %v30_v4, 0  ;;  %v453_v7 = vld [vmem:[%s598_s0] sm:$0xff]  }
   0x5   :  { %399 = vmatpush3.bf16.msra.mxu0 %v42_v6 }
   0x6   :  { %14 = vsyncpa [#allocation3], 0  ;;  %407 = vmatmul.mubr.msk.bf16.vlgmr.msra.gmra.mrb[0].mxu1 %vm36_vm1, %v452_v3  ;;  %v158_v8 = vld [vmem:[%s602_s4] sm:$0xff]  ;;  %v159_v9 = vld [vmem:[%s602_s4 + $0x8] sm:$0xff]  ;;  %v480_v14 = vmov 0.0|0.0   ;;  %vm321_vm3 = vcmask 125952  }
   0x7   :  { %429 = vmatprep.mubr.msk.f32.mxu1 %vm479_vm2, %v478_v5  ;;  %v432_v10 = vpack.c.bf16 %v159_v9, %v158_v8  ;;  %v160_v11 = vld [vmem:[%s602_s4 + $0x10] sm:$0xff]  ;;  %v161_v12 = vld [vmem:[%s602_s4 + $0x18] sm:$0xff]  ;;  %440 = vmatprep.subr.bf16.mxu1 %v480_v14  ;;  %vm162_vm4 = vcmask 261120   ;;  %v247_v29 = vld [vmem:[%s603_s5] sm:$0xf]  ;;  %vm244_vm5 = vcmask 31744  }
   0x8   :  { %401 = vmatmul.mubr.msk.bf16.vlgmr.msra.gmra.mrb[0].mxu0 %vm36_vm1, %v453_v7  ;;  %v436_v13 = vpack.c.bf16 %v161_v12, %v160_v11 }
   0x9   :  { %433 = vmatprep.subr.bf16.mxu0 %v432_v10 }
   0xa   :  { %435 = vmatpush3.bf16.msra.mxu0 %v432_v10 }
   0xb   :  { %437 = vmatprep.subr.bf16.mxu0 %v436_v13 }
   0xe   :  { %439 = vmatpush3.bf16.msra.mxu0 %v436_v13 }
  0xd9   :  { %v408_v15 = vpop.f32.mrb[0].mxu1 }
  0xda   :  { %v380_v16 = vpack.c.bf16 %v408_v15, %v408_v15  ;;  %v143_v17 = vpop.f32.mrb[1].mxu1 }
  0xdb   :  { %v378_v18 = vpack.c.bf16 %v143_v17, %v143_v17  ;;  %v409_v19 = vpop.f32.mrb[2].mxu1  ;;  %v78_v20 = vpop.f32.mrb[0].mxu0 }
  0xdc   :  { %341 = vst.msk [vmem:[%s604_s6 + $0x8] sm:$0xf] %vm321_vm3, %v380_v16  ;;  %v444_v21 = vpack.c.bf16 %v409_v19, %v408_v15  ;;  %v381_v22 = vpack.c.bf16 %v409_v19, %v409_v19  ;;  %v146_v23 = vpop.f32.mrb[3].mxu1  ;;  %v402_v24 = vpop.f32.mrb[1].mxu0  ;;  %418 = vmatprep.mubr.msk.f32.mxu0 %vm162_vm4, %v78_v20 }
  0xdd   :  { %339 = vst.msk [vmem:[%s604_s6] sm:$0xf] %vm321_vm3, %v378_v18  ;;  %v441_v25 = vpack.c.bf16 %v146_v23, %v143_v17  ;;  %v379_v26 = vpack.c.bf16 %v146_v23, %v146_v23  ;;  %v81_v27 = vpop.f32.mrb[2].mxu0 }
  0xde   :  { %342 = vst.msk [vmem:[%s604_s6 + $0xc] sm:$0xf] %vm321_vm3, %v381_v22  ;;  %v403_v28 = vpop.f32.mrb[3].mxu0  ;;  %419 = vmatmul.mubr.msk.f32.vlgmr.msra.gmra.mrb[4].mxu0 %vm162_vm4, %v81_v27 }
  0xdf   :  { %340 = vst.msk [vmem:[%s604_s6 + $0x4] sm:$0xf] %vm321_vm3, %v379_v26  ;;  %442 = vmatpush3.bf16.msra.mxu1 %v441_v25  ;;  %s481_s6 = smov [#allocation2]  }
  0xe0   :  { %443 = vmatprep.subr.bf16.mxu1 %v480_v14  ;;  %s353_s10 = sshll.u32 %s481_s6, 4  ;;  %s354_s10 = int_to_ptr.vmem [resolvable:$true] %s353_s10 }
  0xe1   :  { %s454_s5 = scalar_lea.vmem %s354_s10, 64  ;;  %p459_p1 = scmp.lt.s32.totalorder %s354_s10, %s354_s10 }
  0xe2   :  { %p455_p0 = scmp.ne.s32.totalorder %s354_s10, %s454_s5  ;;  %p460_p2 = scmp.lt.s32.totalorder %s454_s5, %s454_s5 }
  0xe3   :  { %445 = vmatpush3.bf16.msra.mxu1 %v444_v21 }
  0xe4   :  { %p461_p3 = por %p460_p2, %p459_p1 }
  0xe6   :  { %430 = vmatmul.mubr.msk.f32.vlgmr.msra.gmra.mrb[4].mxu1 %vm162_vm4, %v247_v29  ;;  %p462_p4 = pnand %p461_p3, %p455_p0 }
 0x1b1   :  { %v420_v30 = vpop.f32.mrb[4].mxu0 }
 0x1b2   :  { %246 = vst.msk [vmem:[%s605_s7 + $0x8] sm:$0xff] %vm244_vm5, %v420_v30  ;;  %v235_v31 = vpop.f32.mrb[5].mxu0 }
 0x1b3   :  { %245 = vst.msk [vmem:[%s605_s7] sm:$0xff] %vm244_vm5, %v235_v31 }
 0x1b9   :  { %v317_v32 = vpop.f32.mrb[4].mxu1 }
 0x1ba   :  { %322 = vst.msk [vmem:[#allocation2] sm:$0xf] %vm321_vm3, %v317_v32  ;;  %v431_v33 = vpop.f32.mrb[5].mxu1 }
 0x1bb   :  { %465 = shalt.err (!%p462_p4)
}
 0x1bc   :  { %s466_s1 = scalar_lea.hbm %s606_s8, 64 }
 0x1bd   :  { %p467_p5 = scmp.ne.s32.totalorder %s606_s8, %s466_s1  ;;  %p470_p6 = scmp.lt.u32.totalorder %s466_s1, %s606_s8 }
 0x1bf   :  { %p472_p7 = pnand %p470_p6, %p467_p5 }
 0x1c1   :  { %475 = shalt.err (!%p472_p7)
}
 0x1c2   :  { %356 = dma.vmem_to_hbm [thread:$0]  %s354_s10, 64, %s606_s8, [#allocation3]  }
 0x1c3   :  { %476 = dma.done.wait [#allocation3], 64  }
 0x1c4   :  { %477 = vsyncadd [#allocation3], 4294967232 }
 0x1c5   :  { %364 = vsyncpa [#allocation3], 1 }

</bundles_post_ra>
